<compile_context>
chip_gen: v7x
topology: tpu7x:2x2x1
jax: 0.10.0
libtpu: 0.0.40
codegen_flags: <defaults>
</compile_context>

<pallas_src>
import jax
import jax.numpy as jnp
from jax.experimental import pallas as pl
from jax.experimental.pallas import tpu as pltpu


def _make_asp_kernel(seq_len, needs_mask, mxu_dtype):
    """Build the kernel body (seq_len / masking / MXU dtype fixed at trace time)."""

    def asp_kernel(x_ref, w1_ref, b1_ref, w2_ref, b2_ref, mlog_ref, o_ref,
                   l_ref, sx_ref, sxx_ref):
        # x_ref:    (1, C, tT)  native NCL tile (channels on sublanes, time on lanes)
        # w1_ref:   (Bn, C) mxu_dtype     b1_ref: (Bn, 1) f32
        # w2_ref:   (C, Bn) mxu_dtype     b2_ref: (C, 1)  f32
        # mlog_ref: (C, 1)  f32  static per-channel logit upper bound
        # o_ref:    (1, 2, C)  lane-dense output block
        # scratch:  l/sx/sxx (C, 1) f32 running sums over time
        k = pl.program_id(1)

        @pl.when(k == 0)
        def _init():
            l_ref[...] = jnp.zeros_like(l_ref)
            sx_ref[...] = jnp.zeros_like(sx_ref)
            sxx_ref[...] = jnp.zeros_like(sxx_ref)

        x = x_ref[0].astype(jnp.float32)                              # (C, tT)
        tT = x.shape[1]
        if needs_mask:
            col = jax.lax.broadcasted_iota(jnp.int32, (1, tT), 1)
            valid = (k * tT + col) < seq_len                          # (1, tT)
            x = jnp.where(valid, x, 0.0)

        # linear1 (Conv1d k=1) + tanh on the MXU: W1 @ x -> (Bn, tT)
        h = jnp.tanh(
            jnp.dot(w1_ref[...], x.astype(mxu_dtype),
                    preferred_element_type=jnp.float32) + b1_ref[...]
        )
        # linear2 (Conv1d k=1): W2 @ h -> logits (C, tT)
        logits = (
            jnp.dot(w2_ref[...], h.astype(mxu_dtype),
                    preferred_element_type=jnp.float32) + b2_ref[...]
        )

        # Softmax with normalization folded into the statistics.  Since
        # h in (-1, 1), logits <= mlog, so exp(logits - mlog) never overflows;
        # softmax is shift-invariant so the result is exact.  (Assumes
        # 2 * max_c sum_k |W2[c,k]| stays well below ~80 so a whole channel
        # row cannot underflow to 0 -- true for any sanely scaled model.)
        e = jnp.exp(logits - mlog_ref[...])                           # (C, tT)
        if needs_mask:
            e = jnp.where(valid, e, 0.0)
        ex = e * x                                                    # (C, tT)

        l_ref[...] += jnp.sum(e, axis=1, keepdims=True)
        sx_ref[...] += jnp.sum(ex, axis=1, keepdims=True)
        sxx_ref[...] += jnp.sum(ex * x, axis=1, keepdims=True)

        @pl.when(k == pl.num_programs(1) - 1)
        def _finalize():
            # exact reciprocal (tiny, once per batch element) for tight tolerance
            inv_l = pl.reciprocal(l_ref[...], approx=False)           # (C, 1)
            mean = sx_ref[...] * inv_l                                # (C, 1)
            msq = sxx_ref[...] * inv_l                                # (C, 1)
            std = jnp.sqrt(jnp.maximum(msq - mean * mean, 1e-9))      # (C, 1)
            # one small (C,2)->(2,C) transpose per batch element -> lane-dense store
            o_ref[0] = jnp.transpose(
                jnp.concatenate([mean, std], axis=1)).astype(o_ref.dtype)

    return asp_kernel


def _choose_time_tile(T, max_tile):
    if T <= max_tile:
        return T
    # Tiles smaller than T must be lane-aligned; a non-dividing tail is masked
    # in-kernel, so no need for tT to divide T.
    return max(128, (max_tile // 128) * 128)


def _round_up(v, m):
    return (v + m - 1) // m * m


def _vmem_limit_bytes(C, Bn, tT, x_itemsize, w_itemsize):
    """Rough padded VMEM need with headroom, capped below v7x's 64 MiB."""
    x_buf = _round_up(C, 8) * _round_up(tT, 128) * x_itemsize
    weights = (_round_up(Bn, 8) * _round_up(C, 128)
               + _round_up(C, 8) * _round_up(Bn, 128)) * w_itemsize
    vecs = (_round_up(Bn, 8) + 3 * _round_up(C, 8)) * 128 * 4    # b1, b2, mlog
    scratch = 3 * _round_up(C, 8) * 128 * 4                      # l, sx, sxx
    out_buf = 8 * _round_up(C, 128) * 4
    need = 2 * x_buf + 2 * (weights + vecs) + scratch + 2 * out_buf
    return int(min(max(need * 2, 16 << 20), 48 << 20))


def attentive_stats_pool(x_ncl, w1, b1, w2, b2, *, max_time_tile=1024,
                         mxu_dtype=jnp.bfloat16):
    """x_ncl: (B, C, T) in the native PyTorch NCL layout (never transposed).
    w1: (bottleneck, C), b1: (bottleneck,), w2: (C, bottleneck), b2: (C,).
    Returns (B, 2*C) == torch.cat([mean, std], dim=1).

    mxu_dtype: dtype of the matmul operands (statistics always accumulate in
    f32).  bf16 (default) is the fast path; pass jnp.float32 for bit-tight
    agreement with the f32 PyTorch module."""
    B, C, T = x_ncl.shape
    Bn = w1.shape[0]

    tT = _choose_time_tile(T, max_time_tile)
    nT = pl.cdiv(T, tT)
    needs_mask = (T % tT) != 0

    w1m = w1.astype(mxu_dtype)
    w2m = w2.astype(mxu_dtype)
    b1r = b1.astype(jnp.float32).reshape(Bn, 1)
    b2r = b2.astype(jnp.float32).reshape(C, 1)
    # Static per-channel logit upper bound (h = tanh(.) in (-1,1)); replaces
    # the running max of the online softmax exactly (shift-invariance).
    mlog = (jnp.sum(jnp.abs(w2.astype(jnp.float32)), axis=1)
            + b2r[:, 0]).reshape(C, 1)

    kernel = _make_asp_kernel(T, needs_mask, mxu_dtype)

    out = pl.pallas_call(
        kernel,
        out_shape=jax.ShapeDtypeStruct((B, 2, C), x_ncl.dtype),
        grid_spec=pltpu.PrefetchScalarGridSpec(
            num_scalar_prefetch=0,
            grid=(B, nT),
            in_specs=[
                pl.BlockSpec((1, C, tT), lambda b, k: (b, 0, k)),   # x (native NCL)
                pl.BlockSpec((Bn, C), lambda b, k: (0, 0)),         # W1 (resident)
                pl.BlockSpec((Bn, 1), lambda b, k: (0, 0)),         # b1 (resident)
                pl.BlockSpec((C, Bn), lambda b, k: (0, 0)),         # W2 (resident)
                pl.BlockSpec((C, 1), lambda b, k: (0, 0)),          # b2 (resident)
                pl.BlockSpec((C, 1), lambda b, k: (0, 0)),          # logit bound
            ],
            out_specs=pl.BlockSpec((1, 2, C), lambda b, k: (b, 0, 0)),
            scratch_shapes=[
                pltpu.VMEM((C, 1), jnp.float32),   # l   = sum(e)
                pltpu.VMEM((C, 1), jnp.float32),   # sx  = sum(e*x)
                pltpu.VMEM((C, 1), jnp.float32),   # sxx = sum(e*x*x)
            ],
        ),
        compiler_params=pltpu.CompilerParams(
            dimension_semantics=("parallel", "arbitrary"),
            vmem_limit_bytes=_vmem_limit_bytes(
                C, Bn, tT, x_ncl.dtype.itemsize, jnp.dtype(mxu_dtype).itemsize),
        ),
    )(x_ncl, w1m, b1r, w2m, b2r, mlog)

    # (B, 2, C) -> (B, 2C): contiguous reshape, matches cat([mean, std], dim=1)
    return out.reshape(B, 2 * C)


def attentive_stats_pool_ref(x_ncl, w1, b1, w2, b2):
    """Pure-JAX reference mirroring the PyTorch forward."""
    alpha = jnp.tanh(jnp.einsum("oc,bct->bot", w1, x_ncl) + b1[None, :, None])
    logits = jnp.einsum("co,bot->bct", w2, alpha) + b2[None, :, None]
    alpha = jax.nn.softmax(logits, axis=2)
    mean = jnp.sum(alpha * x_ncl, axis=2)
    resid = jnp.sum(alpha * x_ncl ** 2, axis=2) - mean ** 2
    std = jnp.sqrt(jnp.clip(resid, 1e-9, None))
    return jnp.concatenate([mean, std], axis=1)


if __name__ == "__main__":
    B, C, T = 2, 16, 160       # batch, in_dim, time (T % 128 != 0 -> exercises tail mask)
    Bn = 8                     # bottleneck_dim

    key = jax.random.PRNGKey(0)
    kx, k1, k2, k3, k4 = jax.random.split(key, 5)

    x = jax.random.normal(kx, (B, C, T), dtype=jnp.float32)
    # Deterministic synthetic parameters (Conv1d k=1 weights squeezed to 2-D).
    w1 = jax.random.normal(k1, (Bn, C), dtype=jnp.float32) * (1.0 / jnp.sqrt(C))
    b1 = jax.random.normal(k2, (Bn,), dtype=jnp.float32) * 0.1
    w2 = jax.random.normal(k3, (C, Bn), dtype=jnp.float32) * (1.0 / jnp.sqrt(Bn))
    b2 = jax.random.normal(k4, (C,), dtype=jnp.float32) * 0.1

    ref = attentive_stats_pool_ref(x, w1, b1, w2, b2)

    # Fast path: bf16 MXU operands, tiled time (tT=128 -> 2 tiles, masked tail).
    out_fast = attentive_stats_pool(x, w1, b1, w2, b2, max_time_tile=128)
    out_fast = jax.block_until_ready(out_fast)
    assert out_fast.shape == (B, 2 * C), out_fast.shape
    assert jnp.allclose(out_fast, ref, atol=5e-2, rtol=5e-2), \
        float(jnp.max(jnp.abs(out_fast - ref)))

    # Validation path: f32 MXU operands, tight tolerance vs the f32 reference.
    out_f32 = attentive_stats_pool(x, w1, b1, w2, b2, max_time_tile=128,
                                   mxu_dtype=jnp.float32)
    out_f32 = jax.block_until_ready(out_f32)
    assert out_f32.shape == (B, 2 * C), out_f32.shape
    assert jnp.allclose(out_f32, ref, atol=1e-4, rtol=1e-4), \
        float(jnp.max(jnp.abs(out_f32 - ref)))

    print("KERNEL_OK")
</pallas_src>

<mosaic_0001>
module attributes {stable_mosaic.version = 11 : i64} {
  func.func @asp_kernel(%arg0: i32, %arg1: i32, %arg2: memref<1x16x128xf32, #tpu.memory_space<vmem>>, %arg3: memref<8x16xbf16, #tpu.memory_space<vmem>>, %arg4: memref<8x1xf32, #tpu.memory_space<vmem>>, %arg5: memref<16x8xbf16, #tpu.memory_space<vmem>>, %arg6: memref<16x1xf32, #tpu.memory_space<vmem>>, %arg7: memref<16x1xf32, #tpu.memory_space<vmem>>, %arg8: memref<1x2x16xf32, #tpu.memory_space<vmem>>, %arg9: memref<16x1xf32, #tpu.memory_space<vmem>>, %arg10: memref<16x1xf32, #tpu.memory_space<vmem>>, %arg11: memref<16x1xf32, #tpu.memory_space<vmem>>) attributes {dimension_semantics = [#tpu.dimension_semantics<parallel>, #tpu.dimension_semantics<arbitrary>], iteration_bounds = array<i64: 2, 2>, scalar_prefetch = 0 : i64, scratch_operands = 3 : i64, tpu.core_type = #tpu.core_type<tc>, window_params = [{transform_indices = @transform_0, window_bounds = array<i64: 1, 16, 128>}, {pipeline_mode = #tpu.pipeline_mode<synchronous>, transform_indices = @transform_1, window_bounds = array<i64: 8, 16>}, {pipeline_mode = #tpu.pipeline_mode<synchronous>, transform_indices = @transform_2, window_bounds = array<i64: 8, 1>}, {pipeline_mode = #tpu.pipeline_mode<synchronous>, transform_indices = @transform_3, window_bounds = array<i64: 16, 8>}, {pipeline_mode = #tpu.pipeline_mode<synchronous>, transform_indices = @transform_4, window_bounds = array<i64: 16, 1>}, {pipeline_mode = #tpu.pipeline_mode<synchronous>, transform_indices = @transform_5, window_bounds = array<i64: 16, 1>}, {transform_indices = @transform_6, window_bounds = array<i64: 1, 2, 16>}]} {
    %c0_i32 = arith.constant 0 : i32
    %0 = arith.cmpi eq, %arg1, %c0_i32 : i32
    %1 = arith.extui %0 : i1 to i32
    %c0_i32_0 = arith.constant 0 : i32
    %2 = arith.cmpi ne, %1, %c0_i32_0 : i32
    scf.if %2 {
      %cst_32 = arith.constant 0.000000e+00 : f32
      %56 = vector.broadcast %cst_32 : f32 to vector<16x1xf32>
      %c0_33 = arith.constant 0 : index
      %c0_34 = arith.constant 0 : index
      %57 = vector.load %arg9[%c0_33, %c0_34] : memref<16x1xf32, #tpu.memory_space<vmem>>, vector<16x1xf32>
      tpu.vector_store %arg9[%c0_33, %c0_34], %56 {strides = array<i32>} : memref<16x1xf32, #tpu.memory_space<vmem>>, vector<16x1xf32>,
      %cst_35 = arith.constant 0.000000e+00 : f32
      %58 = vector.broadcast %cst_35 : f32 to vector<16x1xf32>
      %c0_36 = arith.constant 0 : index
      %c0_37 = arith.constant 0 : index
      %59 = vector.load %arg10[%c0_36, %c0_37] : memref<16x1xf32, #tpu.memory_space<vmem>>, vector<16x1xf32>
      tpu.vector_store %arg10[%c0_36, %c0_37], %58 {strides = array<i32>} : memref<16x1xf32, #tpu.memory_space<vmem>>, vector<16x1xf32>,
      %cst_38 = arith.constant 0.000000e+00 : f32
      %60 = vector.broadcast %cst_38 : f32 to vector<16x1xf32>
      %c0_39 = arith.constant 0 : index
      %c0_40 = arith.constant 0 : index
      %61 = vector.load %arg11[%c0_39, %c0_40] : memref<16x1xf32, #tpu.memory_space<vmem>>, vector<16x1xf32>
      tpu.vector_store %arg11[%c0_39, %c0_40], %60 {strides = array<i32>} : memref<16x1xf32, #tpu.memory_space<vmem>>, vector<16x1xf32>,
    } else {
    }
    %c0 = arith.constant 0 : index
    %c0_1 = arith.constant 0 : index
    %c0_2 = arith.constant 0 : index
    %3 = vector.load %arg2[%c0, %c0_1, %c0_2] : memref<1x16x128xf32, #tpu.memory_space<vmem>>, vector<1x16x128xf32>
    %4 = vector.shape_cast %3 : vector<1x16x128xf32> to vector<16x128xf32>
    %5 = tpu.iota {dimensions = array<i32: 1>} : vector<1x128xi32>
    %c128_i32 = arith.constant 128 : i32
    %6 = arith.muli %arg1, %c128_i32 : i32
    %7 = vector.broadcast %6 : i32 to vector<1x128xi32>
    %8 = arith.addi %7, %5 : vector<1x128xi32>
    %c160_i32 = arith.constant 160 : i32
    %9 = vector.broadcast %c160_i32 : i32 to vector<1x128xi32>
    %10 = arith.cmpi slt, %8, %9 : vector<1x128xi32>
    %cst = arith.constant 0.000000e+00 : f32
    %11 = vector.shape_cast %10 : vector<1x128xi1> to vector<1x128xi1>
    %12 = vector.broadcast %11 : vector<1x128xi1> to vector<16x128xi1>
    %13 = vector.broadcast %cst : f32 to vector<16x128xf32>
    %14 = arith.select %12, %4, %13 : vector<16x128xi1>, vector<16x128xf32>
    %c0_3 = arith.constant 0 : index
    %c0_4 = arith.constant 0 : index
    %15 = vector.load %arg3[%c0_3, %c0_4] : memref<8x16xbf16, #tpu.memory_space<vmem>>, vector<8x16xbf16>
    %16 = arith.truncf %14 : vector<16x128xf32> to vector<16x128xbf16>
    %cst_5 = arith.constant dense<0.000000e+00> : vector<8x128xf32>
    %17 = tpu.matmul %15, %16, %cst_5 {dimension_numbers = #tpu.dot_dimension_numbers<[1], [0], [0], [1], [0, 0, 1, 1], [], []>} : vector<8x16xbf16>, vector<16x128xbf16>, vector<8x128xf32> -> vector<8x128xf32>
    %c0_6 = arith.constant 0 : index
    %c0_7 = arith.constant 0 : index
    %18 = vector.load %arg4[%c0_6, %c0_7] : memref<8x1xf32, #tpu.memory_space<vmem>>, vector<8x1xf32>
    %19 = vector.broadcast %18 : vector<8x1xf32> to vector<8x128xf32>
    %20 = arith.addf %17, %19 : vector<8x128xf32>
    %21 = math.tanh %20 : vector<8x128xf32>
    %c0_8 = arith.constant 0 : index
    %c0_9 = arith.constant 0 : index
    %22 = vector.load %arg5[%c0_8, %c0_9] : memref<16x8xbf16, #tpu.memory_space<vmem>>, vector<16x8xbf16>
    %23 = arith.truncf %21 : vector<8x128xf32> to vector<8x128xbf16>
    %cst_10 = arith.constant dense<0.000000e+00> : vector<16x128xf32>
    %24 = tpu.matmul %22, %23, %cst_10 {dimension_numbers = #tpu.dot_dimension_numbers<[1], [0], [0], [1], [0, 0, 1, 1], [], []>} : vector<16x8xbf16>, vector<8x128xbf16>, vector<16x128xf32> -> vector<16x128xf32>
    %c0_11 = arith.constant 0 : index
    %c0_12 = arith.constant 0 : index
    %25 = vector.load %arg6[%c0_11, %c0_12] : memref<16x1xf32, #tpu.memory_space<vmem>>, vector<16x1xf32>
    %26 = vector.broadcast %25 : vector<16x1xf32> to vector<16x128xf32>
    %27 = arith.addf %24, %26 : vector<16x128xf32>
    %c0_13 = arith.constant 0 : index
    %c0_14 = arith.constant 0 : index
    %28 = vector.load %arg7[%c0_13, %c0_14] : memref<16x1xf32, #tpu.memory_space<vmem>>, vector<16x1xf32>
    %29 = vector.broadcast %28 : vector<16x1xf32> to vector<16x128xf32>
    %30 = arith.subf %27, %29 : vector<16x128xf32>
    %31 = math.exp %30 : vector<16x128xf32>
    %cst_15 = arith.constant 0.000000e+00 : f32
    %32 = vector.shape_cast %10 : vector<1x128xi1> to vector<1x128xi1>
    %33 = vector.broadcast %32 : vector<1x128xi1> to vector<16x128xi1>
    %34 = vector.broadcast %cst_15 : f32 to vector<16x128xf32>
    %35 = arith.select %33, %31, %34 : vector<16x128xi1>, vector<16x128xf32>
    %36 = arith.mulf %35, %14 : vector<16x128xf32>
    %c0_16 = arith.constant 0 : index
    %c0_17 = arith.constant 0 : index
    %37 = vector.load %arg9[%c0_16, %c0_17] : memref<16x1xf32, #tpu.memory_space<vmem>>, vector<16x1xf32>
    %cst_18 = arith.constant dense<0.000000e+00> : vector<16xf32>
    %38 = vector.multi_reduction <add>, %35, %cst_18 [1] : vector<16x128xf32> to vector<16xf32>
    %39 = vector.shape_cast %38 : vector<16xf32> to vector<16x1xf32>
    %40 = arith.addf %37, %39 : vector<16x1xf32>
    %c0_19 = arith.constant 0 : index
    %c0_20 = arith.constant 0 : index
    %41 = vector.load %arg9[%c0_19, %c0_20] : memref<16x1xf32, #tpu.memory_space<vmem>>, vector<16x1xf32>
    tpu.vector_store %arg9[%c0_19, %c0_20], %40 {strides = array<i32>} : memref<16x1xf32, #tpu.memory_space<vmem>>, vector<16x1xf32>,
    %c0_21 = arith.constant 0 : index
    %c0_22 = arith.constant 0 : index
    %42 = vector.load %arg10[%c0_21, %c0_22] : memref<16x1xf32, #tpu.memory_space<vmem>>, vector<16x1xf32>
    %cst_23 = arith.constant dense<0.000000e+00> : vector<16xf32>
    %43 = vector.multi_reduction <add>, %36, %cst_23 [1] : vector<16x128xf32> to vector<16xf32>
    %44 = vector.shape_cast %43 : vector<16xf32> to vector<16x1xf32>
    %45 = arith.addf %42, %44 : vector<16x1xf32>
    %c0_24 = arith.constant 0 : index
    %c0_25 = arith.constant 0 : index
    %46 = vector.load %arg10[%c0_24, %c0_25] : memref<16x1xf32, #tpu.memory_space<vmem>>, vector<16x1xf32>
    tpu.vector_store %arg10[%c0_24, %c0_25], %45 {strides = array<i32>} : memref<16x1xf32, #tpu.memory_space<vmem>>, vector<16x1xf32>,
    %c0_26 = arith.constant 0 : index
    %c0_27 = arith.constant 0 : index
    %47 = vector.load %arg11[%c0_26, %c0_27] : memref<16x1xf32, #tpu.memory_space<vmem>>, vector<16x1xf32>
    %48 = arith.mulf %36, %14 : vector<16x128xf32>
    %cst_28 = arith.constant dense<0.000000e+00> : vector<16xf32>
    %49 = vector.multi_reduction <add>, %48, %cst_28 [1] : vector<16x128xf32> to vector<16xf32>
    %50 = vector.shape_cast %49 : vector<16xf32> to vector<16x1xf32>
    %51 = arith.addf %47, %50 : vector<16x1xf32>
    %c0_29 = arith.constant 0 : index
    %c0_30 = arith.constant 0 : index
    %52 = vector.load %arg11[%c0_29, %c0_30] : memref<16x1xf32, #tpu.memory_space<vmem>>, vector<16x1xf32>
    tpu.vector_store %arg11[%c0_29, %c0_30], %51 {strides = array<i32>} : memref<16x1xf32, #tpu.memory_space<vmem>>, vector<16x1xf32>,
    %c1_i32 = arith.constant 1 : i32
    %53 = arith.cmpi eq, %arg1, %c1_i32 : i32
    %54 = arith.extui %53 : i1 to i32
    %c0_i32_31 = arith.constant 0 : i32
    %55 = arith.cmpi ne, %54, %c0_i32_31 : i32
    scf.if %55 {
      %c0_32 = arith.constant 0 : index
      %c0_33 = arith.constant 0 : index
      %56 = vector.load %arg9[%c0_32, %c0_33] : memref<16x1xf32, #tpu.memory_space<vmem>>, vector<16x1xf32>
      %57 = tpu.reciprocal %56 : vector<16x1xf32> -> vector<16x1xf32>
      %c0_34 = arith.constant 0 : index
      %c0_35 = arith.constant 0 : index
      %58 = vector.load %arg10[%c0_34, %c0_35] : memref<16x1xf32, #tpu.memory_space<vmem>>, vector<16x1xf32>
      %59 = arith.mulf %58, %57 : vector<16x1xf32>
      %c0_36 = arith.constant 0 : index
      %c0_37 = arith.constant 0 : index
      %60 = vector.load %arg11[%c0_36, %c0_37] : memref<16x1xf32, #tpu.memory_space<vmem>>, vector<16x1xf32>
      %61 = arith.mulf %60, %57 : vector<16x1xf32>
      %62 = arith.mulf %59, %59 : vector<16x1xf32>
      %63 = arith.subf %61, %62 : vector<16x1xf32>
      %cst_38 = arith.constant 9.99999971E-10 : f32
      %64 = vector.broadcast %cst_38 : f32 to vector<16x1xf32>
      %65 = arith.maximumf %63, %64 : vector<16x1xf32>
      %66 = math.sqrt %65 : vector<16x1xf32>
      %67 = tpu.concatenate %59, %66 in 1 : vector<16x1xf32>, vector<16x1xf32> -> vector<16x2xf32>
      %68 = tpu.transpose %67, [1, 0] : vector<16x2xf32> -> vector<2x16xf32>
      %c0_39 = arith.constant 0 : index
      %c0_40 = arith.constant 0 : index
      %c0_41 = arith.constant 0 : index
      %69 = vector.load %arg8[%c0_39, %c0_40, %c0_41] : memref<1x2x16xf32, #tpu.memory_space<vmem>>, vector<1x2x16xf32>
      %70 = vector.shape_cast %69 : vector<1x2x16xf32> to vector<2x16xf32>
      %71 = vector.shape_cast %68 : vector<2x16xf32> to vector<1x2x16xf32>
      tpu.vector_store %arg8[%c0_39, %c0_40, %c0_41], %71 {strides = array<i32>} : memref<1x2x16xf32, #tpu.memory_space<vmem>>, vector<1x2x16xf32>,
    } else {
    }
    return
  }
  func.func @transform_0(%arg0: i32, %arg1: i32) -> (i32, i32, i32) {
    %c0_i32 = arith.constant 0 : i32
    %c0_i32_0 = arith.constant 0 : i32
    return %arg0, %c0_i32, %arg1 : i32, i32, i32
  }
  func.func @transform_1(%arg0: i32, %arg1: i32) -> (i32, i32) {
    %c0_i32 = arith.constant 0 : i32
    %c0_i32_0 = arith.constant 0 : i32
    %c0_i32_1 = arith.constant 0 : i32
    return %c0_i32, %c0_i32_0 : i32, i32
  }
  func.func @transform_2(%arg0: i32, %arg1: i32) -> (i32, i32) {
    %c0_i32 = arith.constant 0 : i32
    %c0_i32_0 = arith.constant 0 : i32
    %c0_i32_1 = arith.constant 0 : i32
    return %c0_i32, %c0_i32_0 : i32, i32
  }
  func.func @transform_3(%arg0: i32, %arg1: i32) -> (i32, i32) {
    %c0_i32 = arith.constant 0 : i32
    %c0_i32_0 = arith.constant 0 : i32
    %c0_i32_1 = arith.constant 0 : i32
    return %c0_i32, %c0_i32_0 : i32, i32
  }
  func.func @transform_4(%arg0: i32, %arg1: i32) -> (i32, i32) {
    %c0_i32 = arith.constant 0 : i32
    %c0_i32_0 = arith.constant 0 : i32
    %c0_i32_1 = arith.constant 0 : i32
    return %c0_i32, %c0_i32_0 : i32, i32
  }
  func.func @transform_5(%arg0: i32, %arg1: i32) -> (i32, i32) {
    %c0_i32 = arith.constant 0 : i32
    %c0_i32_0 = arith.constant 0 : i32
    %c0_i32_1 = arith.constant 0 : i32
    return %c0_i32, %c0_i32_0 : i32, i32
  }
  func.func @transform_6(%arg0: i32, %arg1: i32) -> (i32, i32, i32) {
    %c0_i32 = arith.constant 0 : i32
    %c0_i32_0 = arith.constant 0 : i32
    %c0_i32_1 = arith.constant 0 : i32
    return %arg0, %c0_i32, %c0_i32_0 : i32, i32, i32
  }
}

</mosaic_0001>

<bundles_post_ra>
// kernel: tpu_custom_call.1
= control target key start
LH: loop header
LB: loop body
LE: loop exit
PB: predicated region body
PF: predicated region fallthrough
CT: control target
= control target key end

     0   :  { %s1293_s0 = inlined_call_operand.hbm [shape: f32[2,16,160], index: 0, kind: input, shape index: {}]   ;;  %s1294_s1 = inlined_call_operand.vmem [shape: bf16[8,16], index: 1, kind: input, shape index: {}]   ;;  %s1295_s2 = inlined_call_operand.vmem [shape: f32[8,1], index: 2, kind: input, shape index: {}]   ;;  %s1296_s3 = inlined_call_operand.vmem [shape: bf16[16,8], index: 3, kind: input, shape index: {}]   ;;  %s1297_s4 = inlined_call_operand.vmem [shape: f32[16,1], index: 4, kind: input, shape index: {}]   ;;  %s1298_s5 = inlined_call_operand.vmem [shape: f32[16,1], index: 5, kind: input, shape index: {}]   ;;  %s1299_s6 = inlined_call_operand.hbm [shape: f32[2,2,16], index: 6, kind: output, shape index: {}]  }
   0x1   :  { %1304 = sst [smem:[#allocation15_spill]] %s1293_s0 }
   0x2   :  { %1305 = sst [smem:[#allocation16_spill]] %s1294_s1 }
   0x3   :  { %1306 = sst [smem:[#allocation17_spill]] %s1299_s6 }
   0x4   :  { %11 = vsyncpa [#allocation6], 0 }
   0x5   :  { %13 = vsyncpa [#allocation6 + $0x1], 0 }
   0x6   :  { %14 = vsyncpa [#allocation7], 0 }
   0x7   :  { %16 = vsyncpa [#allocation7 + $0x1], 0  ;;  %s1029_s21 = smov 0   ;;  %s1031_s22 = smov 0  }
   0x8   :  { %s1033_s23 = smov 0   ;;  %s1035_s24 = smov 0  }
   0x9   :  { %s1037_s25 = smov 0   ;;  %s1039_s26 = smov 0  }
   0xa   :  { %s1041_s27 = smov 0   ;;  %s1043_s28 = smov 0  }
   0xb   :  { %s1045_s29 = smov 0   ;;  %s1047_s30 = smov 0  }
   0xc   :  { %s1049_s7 = smov 0  }
   0xd LB: > { %1307 = sst [smem:[#allocation11_spill]] %s970_s28  ;;  %s663_s8 = sadd.s32 4294967295, %s982_s7   ;;  %s982_s7 = sphi %s1049_s7, %s22_s7   ;;  %s978_s30 = sphi %s1047_s30, %s1336_s30   ;;  %s974_s29 = sphi %s1045_s29, %s1335_s29   ;;  %s970_s28 = sphi %s1043_s28, %s1334_s28   ;;  %s966_s27 = sphi %s1041_s27, %s1333_s27   ;;  %s962_s26 = sphi %s1039_s26, %s1332_s26   ;;  %s958_s25 = sphi %s1037_s25, %s1331_s25   ;;  %s954_s24 = sphi %s1035_s24, %s1330_s24   ;;  %s950_s23 = sphi %s1033_s23, %s1329_s23   ;;  %s946_s22 = sphi %s1031_s22, %s1328_s22   ;;  %s942_s21 = sphi %s1029_s21, %s1327_s21  }
   0xe   : > { %s664_s9 = sadd.s32 4294967294, %s982_s7   ;;  %s31_s10 = sadd.s32 1, %s974_s29 }
   0xf   : > { %s34_s11 = sadd.s32 1, %s978_s30  ;;  %p32_p0 = scmp.ge.s32.totalorder %s31_s10, 2 }
  0x10   : > { %s43_s12 = sadd.s32 1, %s962_s26  ;;  %p50_p1 = scmp.ne.s32.totalorder %s962_s26, %s958_s25 }
  0x11   : > { %p51_p2 = scmp.eq.s32.totalorder %s982_s7, 0  ;;  %s1338_s10 = smov (%p32_p0, %s31_s10), 0 }
  0x12   : > { %1308 = sst [smem:[#allocation12_spill]] %s1338_s10  ;;  %s1340_s11 = smov (!%p32_p0, %s34_s11), %s978_s30 }
  0x13   : > { %s39_s13 = ssub.s32 %s974_s29, %s1338_s10  ;;  %p1095_p3 = por %p51_p2, %p50_p1 }
  0x14   : > { %p36_p4 = scmp.ge.s32.totalorder %s1340_s11, 2  ;;  %p56_p5 = scmp.ne.s32.totalorder %s958_s25, %s954_s24 }
  0x15   : > { %p57_p6 = scmp.eq.s32.totalorder %s663_s8, 0  ;;  %s174_s15 = sadd.s32 1, %s950_s23 }
  0x16   : > { %s1342_s11 = smov (%p36_p4, %s1340_s11), 0  ;;  %p184_p8 = scmp.ne.s32.totalorder %s950_s23, %s946_s22 }
  0x17   : > { %1310 = sst [smem:[#allocation13_spill]] %s1342_s11  ;;  %p1103_p7 = por %p57_p6, %p56_p5 }
  0x18   : > { %s38_s17 = ssub.s32 %s978_s30, %s1342_s11  ;;  %p185_p9 = scmp.eq.s32.totalorder %s663_s8, 3 }
  0x19   : > { %s40_s18 = sor.u32 %s39_s13, %s38_s17  ;;  %p172_p10 = scmp.eq.s32.totalorder %s38_s17, 0 }
  0x1a   : > { %p41_p11 = scmp.eq.s32.totalorder %s40_s18, 0  ;;  %p1111_p12 = por %p185_p9, %p184_p8 }
  0x1b   : > { %s1116_s20 = scalar_select %p172_p10, %s950_s23, %s174_s15  }
  0x1c   : > { %s1312_s19 = scalar_select %p1111_p12, 1, 0 }
  0x1d   : > { %1313 = sst [smem:[#allocation14_spill]] %s1116_s20  ;;  %p190_p13 = scmp.ne.s32.totalorder %s946_s22, %s942_s21 }
  0x1e   : > { %s1119_s24 = scalar_select %p41_p11, %s962_s26, %s43_s12  }
  0x1f   : > { %p191_p0 = scmp.eq.s32.totalorder %s664_s9, 3  ;;  %p714_p1 = scmp.lt.s32.totalorder %s982_s7, 4 }
  0x20   : > { %s226_s8 = sand.u32 1, %s962_s26   ;;  %s668_s17 = sshll.u32 %s978_s30, 2 }
  0x21   : > { %p1124_p2 = por %p191_p0, %p190_p13  ;;  %s667_s13 = sshll.u32 %s226_s8, 4 }
  0x22   : > { %s235_s18 = sadd.s32 %s974_s29, %s668_s17  ;;  %s230_s11 = scalar_lea.vmem [#allocation5], %s667_s13 }
  0x23   : > { %s1314_s10 = scalar_select %p1124_p2, 1, 0 }
  0x24   : > { %s238_s6 = sshll.u32 %s230_s11, 4  ;;  %s669_s28 = sshll.u32 %s235_s18, 7  ;;  %s1131_s6 = int_to_ptr.vmem [resolvable:$true] %s238_s6 }
  0x25   : > { %s1315_s0 = sld [smem:[#allocation15_spill]]  ;;  %p1140_p4 = pnand %p714_p1, %p1095_p3 }
  0x26   : > { %s1144_s11 = scalar_lea.sflag [#allocation6], %s226_s8 }
  0x27   : > { %p832_p6 = pneg %p1140_p4 }
  0x2b   : > { %s1136_s12 = scalar_lea.hbm %s1315_s0, %s669_s28  ;;  %s835_s20 = scalar_lea.hbm %s1315_s0, 1024 }
  0x2c   : > { %s830_s13 = scalar_lea.hbm %s1136_s12, 256  ;;  %p836_p3 = scmp.lt.u32.totalorder %s1136_s12, %s1315_s0 }
  0x2d   : > { %p831_p5 = scmp.ne.s32.totalorder %s1136_s12, %s830_s13  ;;  %p837_p10 = scmp.lt.u32.totalorder %s835_s20, %s830_s13 }
  0x2e   : > { %p839_p13 = scmp.lt.u32.totalorder %s830_s13, %s1136_s12 }
  0x2f   : > { %p833_p8 = pnand %p832_p6, %p831_p5  ;;  %p838_p11 = por %p837_p10, %p836_p3 }
  0x31   : > { %p834_p9 = pneg %p833_p8  ;;  %p840_p0 = por %p839_p13, %p838_p11 }
  0x33   : > { %p841_p1 = pnand %p840_p0, %p834_p9 }
  0x35   : > { %844 = shalt.err (!%p841_p1)
}
  0x36   : > { %s845_s8 = scalar_lea.vmem %s1131_s6, 256  ;;  %s984_s15 = smov [#allocation5]  }
  0x37   : > { %p846_p5 = scmp.ne.s32.totalorder %s1131_s6, %s845_s8  ;;  %s850_s28 = sshll.u32 %s984_s15, 4  ;;  %s851_s28 = int_to_ptr.vmem [resolvable:$false] %s850_s28 }
  0x38   : > { %s852_s14 = scalar_lea.vmem %s851_s28, 512  ;;  %p853_p12 = scmp.lt.s32.totalorder %s1131_s6, %s851_s28 }
  0x39   : > { %p848_p8 = pnand %p846_p5, %p832_p6  ;;  %p854_p3 = scmp.lt.s32.totalorder %s852_s14, %s845_s8 }
  0x3b   : > { %p849_p2 = pneg %p848_p8  ;;  %p855_p10 = por %p854_p3, %p853_p12 }
  0x3d   : > { %p856_p11 = pnand %p855_p10, %p849_p2 }
  0x3f   : > { %859 = shalt.err (!%p856_p11)
}
  0x40   : > { %s985_s13 = smov 256   ;;  %s986_s20 = smov 128  }
  0x41   : > { %s987_s17 = smov 8   ;;  %p670_p6 = scmp.ge.s32.totalorder %s982_s7, 1 }
  0x42   : > { %709 = dma.hbm_to_vmem [thread:$0]  (!%p1140_p4), %s1136_s12, 256, %s1131_s6, %s1144_s11, %s985_s13, %s986_s20, %s987_s17  }
  0x43   : > { %p246_p9 = scmp.lt.s32.totalorder %s982_s7, 5 }
  0x45   : > { %p247_p13 = pnand %p670_p6, %p246_p9 }
  0x46   : > { %s252_s18 = sand.u32 (!%p247_p13), 1, %s958_s25  }
  0x47   : > { %250 = sbr.rel (%p247_p13) target bundleno = 1019 (0x3fb), region = 44  ;;  %s671_s8 = sshll.u32 (!%p247_p13), %s252_s18, 4 }
  0x48   : > { %s253_s15 = scalar_lea.sflag (!%p247_p13), [#allocation6], %s252_s18  ;;  %s256_s28 = scalar_lea.vmem (!%p247_p13), [#allocation5], %s671_s8 }
  0x4e   : > { %933 = dma.done.wait (%p1103_p7), %s253_s15, 256  }
  0x4f   : > { %935 = vsyncadd (%p1103_p7), %s253_s15, 4294967040  ;;  %s282_s14 = sand.u32 1, %s946_s22   ;;  %p673_p12 = scmp.ne.s32.totalorder %s966_s27, 0 }
  0x50   : > { %s1182_s6 = sshll.u32 %s282_s14, 1  ;;  %vm290_vm0 = vcmask (!%p673_p12), 7168   ;;  %v988_v0 = vmov (!%p673_p12), 0.0  }
  0x51   : > { %s284_s12 = scalar_lea.vmem [#allocation8], %s1182_s6  ;;  %289 = sbr.rel (%p673_p12) target bundleno = 88 (0x58), region = 52  ;;  %291 = vst.msk [vmem:[#allocation2] sm:$0xff] (!%p673_p12), %vm290_vm0, %v988_v0  ;;  %292 = vst.msk [vmem:[#allocation2 + $0x8] sm:$0xff] (!%p673_p12), %vm290_vm0, %v988_v0 }
  0x52   : > { %293 = vst.msk [vmem:[#allocation3] sm:$0xff] (!%p673_p12), %vm290_vm0, %v988_v0  ;;  %294 = vst.msk [vmem:[#allocation3 + $0x8] sm:$0xff] (!%p673_p12), %vm290_vm0, %v988_v0 }
  0x53   : > { %295 = vst.msk [vmem:[#allocation4] sm:$0xff] (!%p673_p12), %vm290_vm0, %v988_v0  ;;  %296 = vst.msk [vmem:[#allocation4 + $0x8] sm:$0xff] (!%p673_p12), %vm290_vm0, %v988_v0 }
  0x58 PF: > { %v299_v1 = vlaneseq  ;;  %s674_s16 = sshll.u32 %s966_s27, 7  ;;  %v989_v2 = vmov 0.0   ;;  %v1187_v3 = vld [vmem:[%s256_s28] sm:$0xff]  ;;  %v298_v4 = vld [vmem:[%s256_s28 + $0x8] sm:$0xff]  ;;  %vm990_vm1 = vmmov 0   ;;  %v991_v8 = vmov 0  }
  0x59   : > { %690 = vmatprep.subr.bf16.mxu0 %v989_v2  ;;  %v302_v5 = vstv %s674_s16  ;;  %692 = vmatprep.mubr.msk.bf16.mxu0 %vm990_vm1, %v989_v2  ;;  %v311_v6 = vld [vmem:[%s1295_s2] sm:$0xff]  ;;  %v676_v10 = vpack.c.bf16 %v298_v4, %v1187_v3  ;;  %s1317_s1 = sld [smem:[#allocation16_spill]]  ;;  %vm317_vm4 = vcmask 130048   ;;  %v432_v13 = vld [vmem:[%s1298_s5 + $0x8] sm:$0xff]  ;;  %vm386_vm5 = vcmask 1043456   ;;  %v465_v55 = vld [vmem:[#allocation3 + $0x8] sm:$0xff] }
  0x5a   : > { %v300_v7 = vand.u32 127, %v299_v1  ;;  %813 = vset.pattern.permute.xlu0 %v991_v8  ;;  %696 = vmatprep.subr.bf16.mxu1 %v989_v2  ;;  %v365_v11 = vld [vmem:[%s1297_s4] sm:$0xff]  ;;  %v366_v14 = vld [vmem:[%s1297_s4 + $0x8] sm:$0xff]  ;;  %vm382_vm6 = vcmask 64512   ;;  %vm461_vm7 = vcmask 7168   ;;  %v464_v58 = vld [vmem:[#allocation3] sm:$0xff] }
  0x5b   : > { %314 = vperm.xlu0 %813, %v311_v6   ;;  %698 = vmatprep.mubr.msk.bf16.mxu1 %vm990_vm1, %v989_v2  ;;  %v431_v15 = vld [vmem:[%s1298_s5] sm:$0xff]  ;;  %v454_v52 = vld [vmem:[#allocation2 + $0x8] sm:$0xff]  ;;  %p681_p7 = scmp.ne.s32.totalorder %s966_s27, 1 }
  0x5c   : > { %v303_v9 = vadd.s32 %v302_v5, %v300_v7  ;;  %814 = vset.pattern.permute.xlu1 %v991_v8  ;;  %v815_v25 = vld [vmem:[%s1296_s3] sm:$0xff]   ;;  %v475_v61 = vld [vmem:[#allocation4 + $0x8] sm:$0xff]  ;;  %s992_s27 = smov (!%p681_p7), 1   ;;  %vm564_vm12 = vcmask (!%p681_p7), 123904  }
  0x5d   : > { %374 = vperm.xlu1 %814, %v366_v14   ;;  %v453_v50 = vld [vmem:[#allocation2] sm:$0xff] }
  0x5e   : > { %vm304_vm2 = vcmp.lt.s32.totalorder %v303_v9, 160  ;;  %v474_v0 = vld [vmem:[#allocation4] sm:$0xff] }
  0x5f   : > { %vm675_vm3 = vmpackc.low %vm304_vm2, %vm304_vm2  ;;  %369 = vperm.xlu0 %813, %v365_v11   ;;  %v309_v12 = vld [vmem:[%s1317_s1] sm:$0xf]  ;;  %v308_v42 = vsel %vm304_vm2, %v298_v4, 0.0  ;;  %v307_v45 = vsel %vm304_vm2, %v1187_v3, 0.0 }
  0x60   : > { %691 = vmatpush3.bf16.msk.msra.mxu0 %vm675_vm3, %v676_v10 }
  0x61   : > { %435 = vperm.xlu1 %814, %v431_v15  }
  0x63   : > { %693 = vmatmul.mubr.msk.bf16.vlgmr.msra.gmra.mrb[0].mxu0 %vm317_vm4, %v309_v12  ;;  %440 = vperm.xlu0 %813, %v432_v13  }
  0xda   : > { %v315_v16 = vpop.permute.xlu0 %314 }
  0xdc   : > { %v375_v26 = vpop.permute.xlu1 %374 }
  0xde   : > { %v370_v27 = vpop.permute.xlu0 %369 }
  0xe0   : > { %v436_v31 = vpop.permute.xlu1 %435 }
  0xe2   : > { %v441_v36 = vpop.permute.xlu0 %440 }
 0x136   : > { %v355_v17 = vpop.f32.mrb[0].mxu0 }
 0x137   : > { %v356_v18 = vadd.f32 %v355_v17, %v315_v16  ;;  %v694_v19 = vpop.f32.mrb[1].mxu0 }
 0x138   : > { %v358_v20 = vpop.f32.mrb[2].mxu0 }
 0x139   : > { %816 = vtanh.f32 %v356_v18  ;;  %v695_v21 = vpop.f32.mrb[3].mxu0 }
 0x143   : > { %v817_v22 = vpop.eup %816 }
 0x144   : > { %v364_v23 = vpack.c.bf16 %v817_v22, %v817_v22 }
 0x146   : > { %v388_v24 = vsel %vm386_vm5, %v364_v23, 0 }
 0x147   : > { %697 = vmatpush3.bf16.msra.mxu1 %v388_v24 }
 0x14a   : > { %699 = vmatmul.mubr.msk.bf16.vlgmr.msra.gmra.mrb[0].mxu1 %vm382_vm6, %v815_v25 }
 0x21d   : > { %v424_v28 = vpop.f32.mrb[0].mxu1 }
 0x21e   : > { %v425_v29 = vadd.f32 %v424_v28, %v370_v27  ;;  %v700_v30 = vpop.f32.mrb[1].mxu1 }
 0x21f   : > { %v427_v32 = vpop.f32.mrb[2].mxu1 }
 0x220   : > { %v443_v33 = vsub.f32 %v425_v29, %v436_v31  ;;  %v428_v34 = vadd.f32 %v427_v32, %v375_v26  ;;  %v701_v35 = vpop.f32.mrb[3].mxu1 }
 0x222   : > { %v445_v37 = vmul.f32 1.442695, %v443_v33  ;;  %v444_v38 = vsub.f32 %v428_v34, %v441_v36 }
 0x224   : > { %818 = vpow2.f32 %v445_v37  ;;  %v447_v39 = vmul.f32 1.442695, %v444_v38 }
 0x226   : > { %820 = vpow2.f32 %v447_v39 }
 0x22e   : > { %v819_v40 = vpop.eup %818 }
 0x22f   : > { %v449_v41 = vsel %vm304_vm2, %v819_v40, 0.0 }
 0x230   : > { %v821_v43 = vpop.eup %820  ;;  %455 = vadd.xlane.f32.xlu1 %v449_v41  ;;  %v451_v47 = vmul.f32 %v449_v41, %v307_v45 }
 0x231   : > { %v450_v44 = vsel %vm304_vm2, %v821_v43, 0.0 }
 0x232   : > { %457 = vadd.xlane.f32.xlu0 %v450_v44  ;;  %v452_v46 = vmul.f32 %v450_v44, %v308_v42  ;;  %v476_v49 = vmul.f32 %v451_v47, %v307_v45 }
 0x234   : > { %468 = vadd.xlane.f32.xlu1 %v452_v46  ;;  %v477_v48 = vmul.f32 %v452_v46, %v308_v42 }
 0x236   : > { %466 = vadd.xlane.f32.xlu0 %v451_v47 }
 0x238   : > { %480 = vadd.xlane.f32.xlu1 %v477_v48 }
 0x23a   : > { %478 = vadd.xlane.f32.xlu0 %v476_v49 }
 0x2bd   : > { %v456_v51 = vpop.xlane.xlu1 %455 }
 0x2be   : > { %v459_v53 = vadd.f32 %v456_v51, %v453_v50 }
 0x2bf   : > { %v458_v54 = vpop.xlane.xlu0 %457 }
 0x2c0   : > { %462 = vst.msk [vmem:[#allocation2] sm:$0xff] %vm461_vm7, %v459_v53  ;;  %v460_v56 = vadd.f32 %v458_v54, %v454_v52 }
 0x2c1   : > { %v469_v57 = vpop.xlane.xlu1 %468 }
 0x2c2   : > { %463 = vst.msk [vmem:[#allocation2 + $0x8] sm:$0xff] %vm461_vm7, %v460_v56  ;;  %v471_v59 = vadd.f32 %v469_v57, %v465_v55 }
 0x2c3   : > { %v467_v60 = vpop.xlane.xlu0 %466 }
 0x2c4   : > { %473 = vst.msk [vmem:[#allocation3 + $0x8] sm:$0xff] %vm461_vm7, %v471_v59  ;;  %v470_v62 = vadd.f32 %v467_v60, %v464_v58  ;;  %489 = sbr.rel (%p681_p7) target bundleno = 992 (0x3e0), region = 56 }
 0x2c5   : > { %v481_v63 = vpop.xlane.xlu1 %480 }
 0x2c6   : > { %472 = vst.msk [vmem:[#allocation3] sm:$0xff] %vm461_vm7, %v470_v62  ;;  %v483_v1 = vadd.f32 %v481_v63, %v475_v61 }
 0x2c7   : > { %v479_v2 = vpop.xlane.xlu0 %478  ;;  %v490_v4 = vld [vmem:[#allocation2] sm:$0xff] (!%p681_p7) }
 0x2c8   : > { %485 = vst.msk [vmem:[#allocation4 + $0x8] sm:$0xff] %vm461_vm7, %v483_v1  ;;  %v482_v3 = vadd.f32 %v479_v2, %v474_v0  ;;  %822 = vrcp.f32 (!%p681_p7), %v490_v4 }
 0x2c9   : > { %v491_v5 = vld [vmem:[#allocation2 + $0x8] sm:$0xff] (!%p681_p7) }
 0x2ca   : > { %484 = vst.msk [vmem:[#allocation4] sm:$0xff] %vm461_vm7, %v482_v3  ;;  %824 = vrcp.f32 (!%p681_p7), %v491_v5 }
 0x2cb   : > { %v495_v8 = vld [vmem:[#allocation3 + $0x8] sm:$0xff] }
 0x2cd   : > { %v494_v6 = vld [vmem:[#allocation3] sm:$0xff] }
 0x2cf   : > { %v499_v9 = vld [vmem:[#allocation4 + $0x8] sm:$0xff] }
 0x2d1   : > { %v498_v7 = vld [vmem:[#allocation4] sm:$0xff] }
 0x2d2   : > { %v823_v10 = vpop.eup %822 }
 0x2d3   : > { %v496_v12 = vmul.f32 %v823_v10, %v494_v6  ;;  %v500_v13 = vmul.f32 %v823_v10, %v498_v7 }
 0x2d4   : > { %v825_v11 = vpop.eup %824 }
 0x2d5   : > { %v497_v14 = vmul.f32 %v825_v11, %v495_v8  ;;  %v501_v15 = vmul.f32 %v825_v11, %v499_v9  ;;  %v502_v16 = vmul.f32 %v496_v12, %v496_v12 }
 0x2d7   : > { %v503_v17 = vmul.f32 %v497_v14, %v497_v14  ;;  %v504_v18 = vsub.f32 %v500_v13, %v502_v16 }
 0x2d9   : > { %v505_v19 = vsub.f32 %v501_v15, %v503_v17  ;;  %v506_v20 = vmax.f32 %v504_v18, 1e-09 }
 0x2db   : > { %v507_v21 = vmax.f32 %v505_v19, 1e-09  ;;  %826 = vrsqrt.f32 %v506_v20  ;;  %vm510_vm8 = vcmp.eq.f32.partialorder %v506_v20, inf  ;;  %v513_v23 = vand.u32 2147483648, %v506_v20 }
 0x2dc   : > { %vm512_vm9 = vcmp.eq.f32.partialorder %v506_v20, 0.0 }
 0x2dd   : > { %828 = vrsqrt.f32 %v507_v21  ;;  %vm517_vm10 = vcmp.eq.f32.partialorder %v507_v21, inf  ;;  %v520_v27 = vand.u32 2147483648, %v507_v21  ;;  %vm519_vm11 = vcmp.eq.f32.partialorder %v507_v21, 0.0 }
 0x2e5   : > { %v827_v22 = vpop.eup %826 }
 0x2e6   : > { %v509_v25 = vmul.f32 %v827_v22, %v506_v20 }
 0x2e7   : > { %v829_v24 = vpop.eup %828 }
 0x2e8   : > { %v516_v26 = vmul.f32 %v829_v24, %v507_v21  ;;  %v511_v28 = vsel %vm510_vm8, %v506_v20, %v509_v25 }
 0x2e9   : > { %v514_v29 = vsel %vm512_vm9, %v513_v23, %v511_v28 }
 0x2ea   : > { %v518_v30 = vsel %vm517_vm10, %v507_v21, %v516_v26  ;;  %524 = vrot.lane.b32.xlu0 %v514_v29, %s992_s27 }
 0x2eb   : > { %v521_v31 = vsel %vm519_vm11, %v520_v27, %v518_v30 }
 0x2ee   : > { %526 = vrot.lane.b32.xlu0 %v521_v31, %s992_s27 }
 0x35c   : > { %v525_v32 = vpop.permute.xlu0 %524 }
 0x35d   : > { %v530_v33 = vsel %vm461_vm7, %v496_v12, %v525_v32 }
 0x35e   : > { %532 = vxpose.xlu1.b32.start [1/2] (short) (narrow) %v530_v33, 8 }
 0x360   : > { %v527_v34 = vpop.permute.xlu0 %526 }
 0x361   : > { %v531_v35 = vsel %vm461_vm7, %v497_v14, %v527_v34 }
 0x362   : > { %533 = vxpose.xlu1.b32.end [2/2] (short) (narrow) %v531_v35, 8 }
 0x3de   : > { %v548_v36 = vpop.trf.xlu1 }
 0x3df   : > { %565 = vst.msk [vmem:[%s284_s12] sm:$0x3] %vm564_vm12, %v548_v36 }
 0x3e0 PF: > { %s1318_s17 = sld [smem:[#allocation11_spill]]  ;;  %s1319_s28 = sld [smem:[#allocation17_spill]] }
 0x3e1   : > { %s580_s11 = sshll.u32 %s284_s12, 4  ;;  %s567_s13 = scalar_lea.sflag [#allocation7], %s282_s14  ;;  %s581_s11 = int_to_ptr.vmem [resolvable:$true] %s580_s11 }
 0x3e2   : > { %s860_s20 = scalar_lea.vmem %s581_s11, 32  ;;  %p1321_p4 = scmp.ne.s32.totalorder %s1312_s19, 0 }
 0x3e3   : > { %p861_p2 = scmp.ne.s32.totalorder %s581_s11, %s860_s20  ;;  %s993_s27 = smov [#allocation8]  }
 0x3e4   : > { %s864_s0 = sshll.u32 %s993_s27, 4  ;;  %s865_s0 = int_to_ptr.vmem [resolvable:$false] %s864_s0 }
 0x3e5   : > { %p862_p0 = pnand %p861_p2, %p1321_p4  ;;  %s866_s1 = scalar_lea.vmem %s865_s0, 64 }
 0x3e6   : > { %s683_s18 = sshll.u32 %s1318_s17, 5  ;;  %s1320_s16 = smov %s1319_s28 }
 0x3e7   : > { %s1233_s9 = scalar_lea.hbm %s1319_s28, %s683_s18  ;;  %p863_p1 = pneg %p862_p0 }
 0x3e8   : > { %p867_p5 = scmp.lt.s32.totalorder %s581_s11, %s865_s0  ;;  %p868_p8 = scmp.lt.s32.totalorder %s866_s1, %s860_s20 }
 0x3ea   : > { %p869_p3 = por %p868_p8, %p867_p5 }
 0x3ec   : > { %p870_p10 = pnand %p869_p3, %p863_p1 }
 0x3ee   : > { %873 = shalt.err (!%p870_p10)
}
 0x3ef   : > { %s874_s14 = scalar_lea.hbm %s1233_s9, 32  ;;  %s878_s17 = scalar_lea.hbm %s1320_s16, 64 }
 0x3f0   : > { %p875_p11 = scmp.ne.s32.totalorder %s1233_s9, %s874_s14  ;;  %p879_p13 = scmp.lt.u32.totalorder %s1233_s9, %s1320_s16 }
 0x3f1   : > { %p880_p12 = scmp.lt.u32.totalorder %s878_s17, %s874_s14  ;;  %p882_p2 = scmp.lt.u32.totalorder %s874_s14, %s1233_s9 }
 0x3f2   : > { %p876_p6 = pnand %p875_p11, %p1321_p4 }
 0x3f3   : > { %p881_p7 = por %p880_p12, %p879_p13 }
 0x3f4   : > { %p877_p9 = pneg %p876_p6 }
 0x3f5   : > { %p883_p0 = por %p882_p2, %p881_p7 }
 0x3f7   : > { %p884_p1 = pnand %p883_p0, %p877_p9 }
 0x3f9   : > { %887 = shalt.err (!%p884_p1)
}
 0x3fa   : > { %704 = dma.vmem_to_hbm [thread:$0]  (%p1321_p4), %s581_s11, 32, %s1233_s9, %s567_s13  }
 0x3fb PF: > { %p715_p5 = scmp.ge.s32.totalorder %s982_s7, 2  ;;  %s592_s1 = sand.u32 1, %s942_s21  }
 0x3fc   : > { %p1322_p8 = scmp.ne.s32.totalorder %s1314_s10, 0  ;;  %s593_s8 = scalar_lea.sflag [#allocation7], %s592_s1 }
 0x3fe   : > { %p711_p3 = pnand %p715_p5, %p1322_p8 }
 0x400   : > { %937 = dma.done.wait (!%p711_p3), %s593_s8, 32  }
 0x401   : > { %939 = vsyncadd (!%p711_p3), %s593_s8, 4294967264  ;;  %s22_s7 = sadd.s32 1, %s982_s7   ;;  %s1323_s15 = sld [smem:[#allocation14_spill]] }
 0x402   : > { %p19_p10 = scmp.ge.s32.totalorder %s22_s7, 6   ;;  %s1324_s19 = smov %s1119_s24 }
 0x403   : > { %s1325_s9 = sld [smem:[#allocation12_spill]]  ;;  %s1326_s11 = sld [smem:[#allocation13_spill]] }
 0x404   : > { %s1327_s21 = smov %s946_s22  ;;  %s1328_s22 = smov %s950_s23 }
 0x405   : > { %s1330_s24 = smov %s958_s25  ;;  %s1331_s25 = smov %s962_s26 }
 0x406   : > { %s1332_s26 = smov %s1324_s19  ;;  %s1333_s27 = smov %s974_s29 }
 0x407   : > { %s1329_s23 = smov %s1323_s15  ;;  %s1334_s28 = smov %s978_s30 }
 0x408   :  { %21 = sbr.rel (!%p19_p10) target bundleno = 13 (0xd), region = 97 }
 0x409   : > { %s1335_s29 = smov %s1325_s9  ;;  %s1336_s30 = smov %s1326_s11 }
 0x40f   :  { %598 = vsyncpa [#allocation6], 1 }
 0x410   :  { %600 = vsyncpa [#allocation6 + $0x1], 1 }
 0x411   :  { %601 = vsyncpa [#allocation7], 1 }
 0x412   :  { %603 = vsyncpa [#allocation7 + $0x1], 1 }

</bundles_post_ra>
